<compile_context>
chip_gen: v7x
topology: tpu7x:2x2x1
jax: 0.10.0
libtpu: 0.0.40
codegen_flags: <defaults>
</compile_context>

<pallas_src>
import functools

import jax
import jax.numpy as jnp
from jax.experimental import pallas as pl
from jax.experimental.pallas import tpu as pltpu

BN_EPS = 1e-5
IN_F, HID_F, OUT_F = 20, 32, 3


def _fcnn_kernel(xT_ref, w1_ref, b1_ref, w2_ref, b2_ref, o_ref):
    # layer1 (+ folded BatchNorm): (32, 20) @ (20, TB) + (32, 1) -> (32, TB), f32 acc
    h = jnp.dot(w1_ref[...], xT_ref[...],
                preferred_element_type=jnp.float32) + b1_ref[...]
    # ReLU
    h = jnp.maximum(h, 0.0)
    # TODO(synk): training-mode dropout (pltpu.prng_random_bits mask) not implemented.
    # layer2: (3, 32) @ (32, TB) + (3, 1) -> (3, TB)
    # (astype is a no-op in f32 mode; matches W2 dtype in bf16 mode.)
    o_ref[...] = jnp.dot(w2_ref[...], h.astype(w2_ref.dtype),
                         preferred_element_type=jnp.float32) + b2_ref[...]


def _round_up(n, m):
    return ((n + m - 1) // m) * m


def _cdiv(a, b):
    return (a + b - 1) // b


def _fold_bn_into_linear(params):
    """Eval-mode BN folded into the first Linear (done once, fused under jit)."""
    w1, b1, gamma, beta, run_mean, run_var, w2, b2 = params
    inv_std = jax.lax.rsqrt(run_var + BN_EPS)            # (32,)
    scale = gamma * inv_std                              # (32,)
    w1f = w1 * scale[:, None]                            # (32, 20)
    b1f = (b1 - run_mean) * scale + beta                 # (32,)
    return (w1f, b1f.reshape(HID_F, 1), w2, b2.reshape(OUT_F, 1))


@functools.partial(jax.jit, static_argnames=("tb_max", "use_bf16"))
def fcnn_forward(x, params, tb_max=16384, use_bf16=False):
    """x: (B, 20) float32 -> (B, 3) float32."""
    B = x.shape[0]
    w1f, b1f, w2, b2 = _fold_bn_into_linear(params)

    # Batch tile: multiple of 128 (lane width), capped by tb_max; kept small enough
    # that the grid has >= 2 steps whenever there is >= 256 of (rounded) batch so
    # both v7x TensorCores get work. Harmless (~0.35 us) on single-TC chips.
    B_up = _round_up(B, 128)
    TB = min(tb_max, B_up)
    if B_up >= 256:
        TB = min(TB, _round_up(_cdiv(B_up, 2), 128))

    in_dtype = jnp.bfloat16 if use_bf16 else jnp.float32

    # Feature-major layout: batch on the lane (last) dimension. No padding — the
    # ragged last block is masked by Pallas; padded columns never reach the output.
    xT = x.astype(in_dtype).T                             # (20, B)
    w1f = w1f.astype(in_dtype)
    w2 = w2.astype(in_dtype)

    # Only set an explicit VMEM limit if a user-raised tb_max could blow past
    # v5e's 16 MiB default scoped VMEM (default tb_max stays well under it).
    itemsize = 2 if use_bf16 else 4
    pipeline_bytes = 2 * TB * (IN_F * itemsize + OUT_F * 4)
    cp_kwargs = dict(dimension_semantics=("parallel",))
    if pipeline_bytes > 12 * 1024 * 1024:
        cp_kwargs["vmem_limit_bytes"] = min(2 * pipeline_bytes, 48 * 1024 * 1024)

    grid = (_cdiv(B, TB),)
    outT = pl.pallas_call(
        _fcnn_kernel,
        out_shape=jax.ShapeDtypeStruct((OUT_F, B), jnp.float32),
        grid=grid,
        in_specs=[
            pl.BlockSpec((IN_F, TB), lambda i: (0, i)),       # x tile, pipelined
            pl.BlockSpec((HID_F, IN_F), lambda i: (0, 0)),    # W1' (BN folded) resident
            pl.BlockSpec((HID_F, 1), lambda i: (0, 0)),       # b1' resident
            pl.BlockSpec((OUT_F, HID_F), lambda i: (0, 0)),   # W2 resident
            pl.BlockSpec((OUT_F, 1), lambda i: (0, 0)),       # b2 resident
        ],
        out_specs=pl.BlockSpec((OUT_F, TB), lambda i: (0, i)),
        compiler_params=pltpu.CompilerParams(**cp_kwargs),
    )(xT, w1f, b1f, w2, b2)

    return outT.T                                          # (B, 3)


def init_params(key):
    """Deterministic params in PyTorch layout (weight = (out_f, in_f))."""
    k1, k2, k3, k4, k5, k6, k7 = jax.random.split(key, 7)
    w1 = jax.random.normal(k1, (HID_F, IN_F), jnp.float32) * 0.1
    b1 = jax.random.normal(k2, (HID_F,), jnp.float32) * 0.01
    # BatchNorm1d(32): non-trivial affine + running stats so the fold is exercised.
    gamma = 1.0 + 0.1 * jax.random.normal(k5, (HID_F,), jnp.float32)
    beta = 0.1 * jax.random.normal(k6, (HID_F,), jnp.float32)
    run_mean = 0.1 * jax.random.normal(k7, (HID_F,), jnp.float32)
    run_var = jnp.ones((HID_F,), jnp.float32) * 0.9
    w2 = jax.random.normal(k3, (OUT_F, HID_F), jnp.float32) * 0.1
    b2 = jax.random.normal(k4, (OUT_F,), jnp.float32) * 0.01
    return (w1, b1, gamma, beta, run_mean, run_var, w2, b2)


def reference_forward(x, params):
    """Pure-JAX reference of the un-folded forward pass (eval semantics)."""
    w1, b1, gamma, beta, run_mean, run_var, w2, b2 = params
    h = x @ w1.T + b1
    h = (h - run_mean) / jnp.sqrt(run_var + BN_EPS) * gamma + beta
    h = jnp.maximum(h, 0.0)
    return h @ w2.T + b2


if __name__ == "__main__":
    key = jax.random.PRNGKey(0)
    pkey, xkey, x2key, x3key = jax.random.split(key, 4)
    params = init_params(pkey)

    # data['img'] -> small batch of 20-feature rows fed to the pretrained net.
    batch = 8
    x = jax.random.normal(xkey, (batch, IN_F), jnp.float32)
    out = fcnn_forward(x, params)
    jax.block_until_ready(out)
    ref = reference_forward(x, params)
    assert out.shape == (batch, OUT_F)
    assert jnp.allclose(out, ref, atol=1e-4, rtol=1e-4)

    # Multi-step grid with a ragged (non-multiple-of-TB) batch.
    batch2 = 300
    x2 = jax.random.normal(x2key, (batch2, IN_F), jnp.float32)
    out2 = fcnn_forward(x2, params, tb_max=128)
    jax.block_until_ready(out2)
    ref2 = reference_forward(x2, params)
    assert out2.shape == (batch2, OUT_F)
    assert jnp.allclose(out2, ref2, atol=1e-4, rtol=1e-4)

    # Optional bf16 feed of the MXU (f32 accumulation); looser tolerance by design.
    batch3 = 512
    x3 = jax.random.normal(x3key, (batch3, IN_F), jnp.float32)
    out3 = fcnn_forward(x3, params, use_bf16=True)
    jax.block_until_ready(out3)
    ref3 = reference_forward(x3, params)
    assert out3.shape == (batch3, OUT_F)
    assert jnp.allclose(out3, ref3, atol=5e-2, rtol=5e-2)

    print("KERNEL_OK")
</pallas_src>

<mosaic_0001>
module attributes {stable_mosaic.version = 11 : i64} {
  func.func @_fcnn_kernel(%arg0: i32, %arg1: memref<20x128xf32, #tpu.memory_space<vmem>>, %arg2: memref<32x20xf32, #tpu.memory_space<vmem>>, %arg3: memref<32x1xf32, #tpu.memory_space<vmem>>, %arg4: memref<3x32xf32, #tpu.memory_space<vmem>>, %arg5: memref<3x1xf32, #tpu.memory_space<vmem>>, %arg6: memref<3x128xf32, #tpu.memory_space<vmem>>) attributes {dimension_semantics = [#tpu.dimension_semantics<parallel>], iteration_bounds = array<i64: 1>, scalar_prefetch = 0 : i64, scratch_operands = 0 : i64, tpu.core_type = #tpu.core_type<tc>, window_params = [{transform_indices = @transform_0, window_bounds = array<i64: 20, 128>}, {pipeline_mode = #tpu.pipeline_mode<synchronous>, transform_indices = @transform_1, window_bounds = array<i64: 32, 20>}, {pipeline_mode = #tpu.pipeline_mode<synchronous>, transform_indices = @transform_2, window_bounds = array<i64: 32, 1>}, {pipeline_mode = #tpu.pipeline_mode<synchronous>, transform_indices = @transform_3, window_bounds = array<i64: 3, 32>}, {pipeline_mode = #tpu.pipeline_mode<synchronous>, transform_indices = @transform_4, window_bounds = array<i64: 3, 1>}, {transform_indices = @transform_5, window_bounds = array<i64: 3, 128>}]} {
    %c0 = arith.constant 0 : index
    %c0_0 = arith.constant 0 : index
    %0 = vector.load %arg2[%c0, %c0_0] : memref<32x20xf32, #tpu.memory_space<vmem>>, vector<32x20xf32>
    %c0_1 = arith.constant 0 : index
    %c0_2 = arith.constant 0 : index
    %1 = vector.load %arg1[%c0_1, %c0_2] : memref<20x128xf32, #tpu.memory_space<vmem>>, vector<20x128xf32>
    %cst = arith.constant dense<0.000000e+00> : vector<32x128xf32>
    %2 = tpu.matmul %0, %1, %cst {dimension_numbers = #tpu.dot_dimension_numbers<[1], [0], [0], [1], [0, 0, 1, 1], [], []>} : vector<32x20xf32>, vector<20x128xf32>, vector<32x128xf32> -> vector<32x128xf32>
    %c0_3 = arith.constant 0 : index
    %c0_4 = arith.constant 0 : index
    %3 = vector.load %arg3[%c0_3, %c0_4] : memref<32x1xf32, #tpu.memory_space<vmem>>, vector<32x1xf32>
    %4 = vector.broadcast %3 : vector<32x1xf32> to vector<32x128xf32>
    %5 = arith.addf %2, %4 : vector<32x128xf32>
    %cst_5 = arith.constant 0.000000e+00 : f32
    %6 = vector.broadcast %cst_5 : f32 to vector<32x128xf32>
    %7 = arith.maximumf %5, %6 : vector<32x128xf32>
    %c0_6 = arith.constant 0 : index
    %c0_7 = arith.constant 0 : index
    %8 = vector.load %arg4[%c0_6, %c0_7] : memref<3x32xf32, #tpu.memory_space<vmem>>, vector<3x32xf32>
    %cst_8 = arith.constant dense<0.000000e+00> : vector<3x128xf32>
    %9 = tpu.matmul %8, %7, %cst_8 {dimension_numbers = #tpu.dot_dimension_numbers<[1], [0], [0], [1], [0, 0, 1, 1], [], []>} : vector<3x32xf32>, vector<32x128xf32>, vector<3x128xf32> -> vector<3x128xf32>
    %c0_9 = arith.constant 0 : index
    %c0_10 = arith.constant 0 : index
    %10 = vector.load %arg5[%c0_9, %c0_10] : memref<3x1xf32, #tpu.memory_space<vmem>>, vector<3x1xf32>
    %11 = vector.broadcast %10 : vector<3x1xf32> to vector<3x128xf32>
    %12 = arith.addf %9, %11 : vector<3x128xf32>
    %c0_11 = arith.constant 0 : index
    %c0_12 = arith.constant 0 : index
    %13 = vector.load %arg6[%c0_11, %c0_12] : memref<3x128xf32, #tpu.memory_space<vmem>>, vector<3x128xf32>
    tpu.vector_store %arg6[%c0_11, %c0_12], %12 {strides = array<i32>} : memref<3x128xf32, #tpu.memory_space<vmem>>, vector<3x128xf32>,
    return
  }
  func.func @transform_0(%arg0: i32) -> (i32, i32) {
    %c0_i32 = arith.constant 0 : i32
    %c0_i32_0 = arith.constant 0 : i32
    return %c0_i32, %arg0 : i32, i32
  }
  func.func @transform_1(%arg0: i32) -> (i32, i32) {
    %c0_i32 = arith.constant 0 : i32
    %c0_i32_0 = arith.constant 0 : i32
    %c0_i32_1 = arith.constant 0 : i32
    return %c0_i32, %c0_i32_0 : i32, i32
  }
  func.func @transform_2(%arg0: i32) -> (i32, i32) {
    %c0_i32 = arith.constant 0 : i32
    %c0_i32_0 = arith.constant 0 : i32
    %c0_i32_1 = arith.constant 0 : i32
    return %c0_i32, %c0_i32_0 : i32, i32
  }
  func.func @transform_3(%arg0: i32) -> (i32, i32) {
    %c0_i32 = arith.constant 0 : i32
    %c0_i32_0 = arith.constant 0 : i32
    %c0_i32_1 = arith.constant 0 : i32
    return %c0_i32, %c0_i32_0 : i32, i32
  }
  func.func @transform_4(%arg0: i32) -> (i32, i32) {
    %c0_i32 = arith.constant 0 : i32
    %c0_i32_0 = arith.constant 0 : i32
    %c0_i32_1 = arith.constant 0 : i32
    return %c0_i32, %c0_i32_0 : i32, i32
  }
  func.func @transform_5(%arg0: i32) -> (i32, i32) {
    %c0_i32 = arith.constant 0 : i32
    %c0_i32_0 = arith.constant 0 : i32
    return %c0_i32, %arg0 : i32, i32
  }
}

</mosaic_0001>

<bundles_post_ra>
// kernel: fcnn_forward.1
= control target key start
LH: loop header
LB: loop body
LE: loop exit
PB: predicated region body
PF: predicated region fallthrough
CT: control target
= control target key end

     0   :  { %vm52_vm0 = vcmask 162816   ;;  %vm65_vm1 = vcmask 1043456   ;;  %v336_v5 = vmov 0   ;;  %s428_s0 = inlined_call_operand.vmem [shape: f32[20,8], index: 0, kind: input, shape index: {}]   ;;  %s429_s1 = inlined_call_operand.vmem [shape: f32[32,20], index: 1, kind: input, shape index: {}]   ;;  %s430_s2 = inlined_call_operand.vmem [shape: f32[32,1], index: 2, kind: input, shape index: {}]   ;;  %s431_s3 = inlined_call_operand.vmem [shape: f32[3,32], index: 3, kind: input, shape index: {}]   ;;  %s432_s4 = inlined_call_operand.vmem [shape: f32[3,1], index: 4, kind: input, shape index: {}]   ;;  %s433_s5 = inlined_call_operand.hbm [shape: f32[3,8], index: 5, kind: output, shape index: {}]  }
   0x1   :  { %v25_v0 = vld [vmem:[%s428_s0] sm:$0xff]  ;;  %v26_v1 = vld [vmem:[%s428_s0 + $0x8] sm:$0xff]  ;;  %v27_v4 = vld [vmem:[%s428_s0 + $0x10] sm:$0xf]  ;;  %310 = vset.pattern.permute.xlu0 %v336_v5  ;;  %311 = vset.pattern.permute.xlu1 %v336_v5 }
   0x2   :  { %v295_v2 = vpack.c.bf16 %v26_v1, %v25_v0  ;;  %v21_v3 = vld [vmem:[%s429_s1] sm:$0xff]  ;;  %v30_v7 = vld [vmem:[%s430_s2 + $0x10] sm:$0xff]  ;;  %v29_v8 = vld [vmem:[%s430_s2 + $0x8] sm:$0xff] }
   0x3   :  { %278 = vmatprep.mubr.msk.f32.mxu0 %vm52_vm0, %v21_v3  ;;  %v28_v6 = vld [vmem:[%s430_s2] sm:$0xff] }
   0x4   :  { %296 = vmatprep.subr.bf16.mxu0 %v295_v2  ;;  %34 = vperm.xlu0 %310, %v28_v6  }
   0x5   :  { %298 = vmatpush3.bf16.msra.mxu0 %v295_v2 }
   0x6   :  { %10 = vsyncpa [#allocation3], 0  ;;  %276 = vmatprep.subr.msk.mxu0 %vm65_vm1, %v27_v4  ;;  %44 = vperm.xlu1 %311, %v30_v7   ;;  %v22_v9 = vld [vmem:[%s429_s1 + $0x8] sm:$0xff]  ;;  %v31_v10 = vld [vmem:[%s430_s2 + $0x18] sm:$0xff]  ;;  %v337_v14 = vmov 0.0|0.0   ;;  %vm338_vm2 = vmmov 0  }
   0x7   :  { %v23_v11 = vld [vmem:[%s429_s1 + $0x10] sm:$0xff]  ;;  %v159_v12 = vld [vmem:[%s432_s4] sm:$0x7]  ;;  %v24_v13 = vld [vmem:[%s429_s1 + $0x18] sm:$0xff]  ;;  %299 = vmatprep.subr.bf16.mxu1 %v337_v14  ;;  %v339_v15 = vmov 0.0   ;;  %vm165_vm3 = vcmask 261120  }
   0x8   :  { %39 = vperm.xlu0 %310, %v29_v8   ;;  %292 = vmatprep.mubr.msk.f32.mxu1 %vm338_vm2, %v339_v15  ;;  %v158_v34 = vld [vmem:[%s431_s3] sm:$0x7]  ;;  %s340_s4 = smov [#allocation2]  }
   0x9   :  { %277 = vmatpush3.msk.msra.mxu0 %vm65_vm1, %v27_v4  ;;  %s246_s16 = sshll.u32 %s340_s4, 4  ;;  %s247_s16 = int_to_ptr.vmem [resolvable:$true] %s246_s16 }
   0xa   :  { %279 = vmatmul.mubr.msk.f32.vlgmr.msra.gmra.mrb[0].mxu0 %vm52_vm0, %v22_v9  ;;  %49 = vperm.xlu1 %311, %v31_v10   ;;  %s312_s17 = scalar_lea.vmem %s247_s16, 64  ;;  %p317_p1 = scmp.lt.s32.totalorder %s247_s16, %s247_s16 }
   0xb   :  { %281 = vmatprep.mubr.msk.f32.mxu0 %vm52_vm0, %v23_v11  ;;  %p313_p0 = scmp.ne.s32.totalorder %s247_s16, %s312_s17  ;;  %p318_p2 = scmp.lt.s32.totalorder %s312_s17, %s312_s17 }
   0xc   :  { %162 = vperm.xlu0 %310, %v159_v12  }
   0xd   :  { %p319_p3 = por %p318_p2, %p317_p1 }
   0xe   :  { %282 = vmatmul.mubr.msk.f32.gmra.mrb[2].mxu0 %vm52_vm0, %v24_v13 }
   0xf   :  { %p320_p4 = pnand %p319_p3, %p313_p0 }
  0x83   :  { %v35_v16 = vpop.permute.xlu0 %34 }
  0x85   :  { %v45_v17 = vpop.permute.xlu1 %44 }
  0x87   :  { %v40_v18 = vpop.permute.xlu0 %39 }
  0x89   :  { %v50_v24 = vpop.permute.xlu1 %49 }
  0x8b   :  { %v163_v35 = vpop.permute.xlu0 %162 }
  0xdd   :  { %v280_v19 = vpop.f32.mrb[0].mxu0 }
  0xde   :  { %v141_v20 = vadd.f32 %v280_v19, %v40_v18  ;;  %v135_v21 = vpop.f32.mrb[1].mxu0 }
  0xdf   :  { %v136_v22 = vadd.f32 %v135_v21, %v35_v16 }
  0xe0   :  { %v155_v23 = vmax.f32 %v141_v20, 0.0 }
  0xe1   :  { %v154_v25 = vmax.f32 %v136_v22, 0.0  ;;  %v283_v26 = vpop.f32.mrb[2].mxu0 }
  0xe2   :  { %v151_v27 = vadd.f32 %v283_v26, %v50_v24  ;;  %v145_v28 = vpop.f32.mrb[3].mxu0 }
  0xe3   :  { %v146_v29 = vadd.f32 %v145_v28, %v45_v17  ;;  %v300_v30 = vpack.c.bf16 %v155_v23, %v154_v25 }
  0xe4   :  { %v157_v31 = vmax.f32 %v151_v27, 0.0 }
  0xe5   :  { %v156_v32 = vmax.f32 %v146_v29, 0.0  ;;  %301 = vmatpush3.bf16.msra.mxu1 %v300_v30 }
  0xe6   :  { %302 = vmatprep.subr.bf16.mxu1 %v337_v14 }
  0xe7   :  { %v303_v33 = vpack.c.bf16 %v157_v31, %v156_v32 }
  0xe9   :  { %304 = vmatpush3.bf16.msra.mxu1 %v303_v33 }
  0xec   :  { %293 = vmatmul.mubr.msk.f32.vlgmr.msra.gmra.mrb[0].mxu1 %vm165_vm3, %v158_v34 }
 0x1bf   :  { %v235_v36 = vpop.f32.mrb[0].mxu1 }
 0x1c0   :  { %v236_v37 = vadd.f32 %v235_v36, %v163_v35  ;;  %v294_v38 = vpop.f32.mrb[1].mxu1 }
 0x1c2   :  { %239 = vst [vmem:[#allocation2] sm:$0x7] %v236_v37 }
 0x1c3   :  { %323 = shalt.err (!%p320_p4)
}
 0x1c4   :  { %s324_s3 = scalar_lea.hbm %s433_s5, 64 }
 0x1c5   :  { %p325_p5 = scmp.ne.s32.totalorder %s433_s5, %s324_s3  ;;  %p328_p6 = scmp.lt.u32.totalorder %s324_s3, %s433_s5 }
 0x1c7   :  { %p330_p7 = pnand %p328_p6, %p325_p5 }
 0x1c9   :  { %333 = shalt.err (!%p330_p7)
}
 0x1ca   :  { %249 = dma.vmem_to_hbm [thread:$0]  %s247_s16, 64, %s433_s5, [#allocation3]  }
 0x1cb   :  { %334 = dma.done.wait [#allocation3], 64  }
 0x1cc   :  { %335 = vsyncadd [#allocation3], 4294967232 }
 0x1cd   :  { %253 = vsyncpa [#allocation3], 1 }

</bundles_post_ra>
